<compile_context>
chip_gen: v5e
topology: v5e:2x2
jax: 0.10.0
libtpu: 0.0.40
codegen_flags: <defaults>
</compile_context>

<pallas_src>
import jax
import jax.numpy as jnp
import numpy as np
from jax.experimental import pallas as pl
from jax.experimental.pallas import tpu as pltpu


# --------------------------------------------------------------------------
# Kernels
# --------------------------------------------------------------------------

def gru_kernel(enc_ref, h_ref, wi3_ref, wh3_ref, bi3_ref, bh3_ref,
               hnew_ref, hbf16_ref):
    """Fused GRUCell. Gate columns are padded to Hp = round_up(H, 128)."""
    H = h_ref.shape[1]
    Hp = bi3_ref.shape[1] // 3

    enc = enc_ref[...]                           # (B, H) f32
    h_prev = h_ref[...]                          # (B, H) f32

    # Match the LHS dtype to the stored weight dtype (f32 by default -> no-op
    # cast, full-precision recurrence; bf16 weights -> native bf16 MXU path).
    wdt = wi3_ref.dtype
    gi = jnp.dot(enc.astype(wdt), wi3_ref[...],
                 preferred_element_type=jnp.float32) + bi3_ref[...]
    gh = jnp.dot(h_prev.astype(wdt), wh3_ref[...],
                 preferred_element_type=jnp.float32) + bh3_ref[...]

    # PyTorch GRUCell gate order: [r | z | n], lane-aligned at Hp boundaries.
    r = jax.nn.sigmoid(gi[:, 0:Hp] + gh[:, 0:Hp])
    z = jax.nn.sigmoid(gi[:, Hp:2 * Hp] + gh[:, Hp:2 * Hp])
    n = jnp.tanh(gi[:, 2 * Hp:3 * Hp] + r * gh[:, 2 * Hp:3 * Hp])

    h_new = (1.0 - z[:, :H]) * n[:, :H] + z[:, :H] * h_prev

    hnew_ref[...] = h_new                        # f32 hidden state (returned)
    hbf16_ref[...] = h_new.astype(jnp.bfloat16)  # bf16 LHS for the projection


def proj_kernel(h_ref, wout_ref, bout_ref, out_ref):
    """(B, H)bf16 @ (H, tn)bf16 -> (B, tn)f32, one lane-dense vocab tile/step."""
    out_ref[...] = jnp.dot(h_ref[...], wout_ref[...],
                           preferred_element_type=jnp.float32) + bout_ref[...]


# --------------------------------------------------------------------------
# Parameter preparation (all layout work hoisted out of the per-step forward)
# --------------------------------------------------------------------------

def _round_up(x, m):
    return ((x + m - 1) // m) * m


def _fuse_gate_weight(w, Hp, dtype):
    """PyTorch (3H, H) GRU weight -> fused transposed (H, 3*Hp), zero-padded."""
    H = w.shape[1]
    wt = w.T.reshape(H, 3, H)                    # gate-major columns [r|z|n]
    wt = jnp.pad(wt, ((0, 0), (0, 0), (0, Hp - H)))
    return wt.reshape(H, 3 * Hp).astype(dtype)


def _fuse_gate_bias(b, Hp):
    H = b.shape[0] // 3
    bt = jnp.pad(b.reshape(3, H), ((0, 0), (0, Hp - H)))
    return bt.reshape(1, 3 * Hp).astype(jnp.float32)


def prepare_params(params, out_weights_dtype=jnp.bfloat16,
                   gru_weights_dtype=jnp.float32):
    """One-time prep: transposes, gate fusion + 128-lane gate padding, dtypes.

    GRU weights default to f32 (exact recurrence, no in-kernel upcast); the
    streamed output-projection weight is bf16 (halves the dominant HBM stream).
    """
    H = params["w_hh"].shape[1]
    V = params["embedding"].shape[0]
    Hp = _round_up(H, 128)
    return {
        "embedding": params["embedding"].astype(jnp.float32),          # (V, H)
        "w_i3": _fuse_gate_weight(params["w_ih"], Hp, gru_weights_dtype),
        "w_h3": _fuse_gate_weight(params["w_hh"], Hp, gru_weights_dtype),
        "b_i3": _fuse_gate_bias(params["b_ih"], Hp),                    # (1, 3Hp)
        "b_h3": _fuse_gate_bias(params["b_hh"], Hp),
        "w_out": params["w_out"].T.astype(out_weights_dtype),           # (H, V)
        "b_out": params["b_out"].reshape(1, V).astype(jnp.float32),
    }


# --------------------------------------------------------------------------
# Forward
# --------------------------------------------------------------------------

def _vmem_limit_bytes(buffer_bytes):
    # Computed working set + headroom for internal scratch, capped at the
    # smallest per-core physical VMEM across targets (v7x: 64 MiB).
    return int(max(16 << 20, min(int(buffer_bytes) + (4 << 20), 64 << 20)))


def _pick_tn(V):
    # Projection is HBM-bound on the w_out stream: prefer big, lane-dense tiles
    # (>=512) that divide V so the last tile is not a masked partial store.
    if V <= 1024:
        return V
    for cand in (2048, 1536, 1024, 512):
        if V % cand == 0:
            return cand
    return 1024


def no_attention_decoder_forward(x, h_prev, prepared, inputs=None, tn=None):
    """x: (B, 1) int32 token ids; h_prev: (B, H) f32.

    Returns (output (B, V) f32, h_new (B, H) f32, None) — same contract as
    PyTorch NoAttentionDecoder.forward (`inputs` is unused).
    """
    del inputs
    B = x.shape[0]
    H = h_prev.shape[1]
    Hp3 = prepared["b_i3"].shape[1]
    V = prepared["w_out"].shape[1]

    # Embedding lookup: direct row gather in the wrapper (B*H*4 bytes).
    encoded = prepared["embedding"][x[:, 0]]                           # (B, H) f32

    resident = pl.Buffered(1)   # constant-index operands: no wasted 2nd buffer

    # ---------------- Kernel 1: GRU cell (single grid step) ----------------
    gru_operands = (encoded, h_prev,
                    prepared["w_i3"], prepared["w_h3"],
                    prepared["b_i3"], prepared["b_h3"])
    gru_in_bytes = sum(int(a.size) * a.dtype.itemsize for a in gru_operands)
    gru_out_bytes = B * H * (4 + 2)
    gru_cost = pl.CostEstimate(flops=int(2 * 2 * B * H * Hp3),
                               transcendentals=int(3 * B * Hp3),
                               bytes_accessed=int(gru_in_bytes + gru_out_bytes))

    h_new, h_bf16 = pl.pallas_call(
        gru_kernel,
        out_shape=(jax.ShapeDtypeStruct((B, H), jnp.float32),
                   jax.ShapeDtypeStruct((B, H), jnp.bfloat16)),
        grid=(1,),
        in_specs=[
            pl.BlockSpec((B, H), lambda i: (0, 0), pipeline_mode=resident),
            pl.BlockSpec((B, H), lambda i: (0, 0), pipeline_mode=resident),
            pl.BlockSpec((H, Hp3), lambda i: (0, 0), pipeline_mode=resident),
            pl.BlockSpec((H, Hp3), lambda i: (0, 0), pipeline_mode=resident),
            pl.BlockSpec((1, Hp3), lambda i: (0, 0), pipeline_mode=resident),
            pl.BlockSpec((1, Hp3), lambda i: (0, 0), pipeline_mode=resident),
        ],
        out_specs=(
            pl.BlockSpec((B, H), lambda i: (0, 0)),
            pl.BlockSpec((B, H), lambda i: (0, 0)),
        ),
        cost_estimate=gru_cost,
        compiler_params=pltpu.CompilerParams(
            dimension_semantics=("arbitrary",),
            vmem_limit_bytes=_vmem_limit_bytes(gru_in_bytes + 2 * gru_out_bytes)),
    )(*gru_operands)

    # ------------- Kernel 2: vocab-tiled output projection -----------------
    if tn is None:
        tn = _pick_tn(V)
    grid = (pl.cdiv(V, tn),)

    proj_operands = (h_bf16, prepared["w_out"], prepared["b_out"])
    proj_bytes = (sum(int(a.size) * a.dtype.itemsize for a in proj_operands)
                  + B * V * 4)
    proj_cost = pl.CostEstimate(flops=int(2 * B * H * V),
                                transcendentals=0,
                                bytes_accessed=int(proj_bytes))
    # Resident bf16 LHS (1 buffer) + double-buffered streamed tiles + outputs.
    proj_vmem = (B * H * 2
                 + 2 * (H * tn * 2 + tn * 4)
                 + 2 * (B * tn * 4))

    output = pl.pallas_call(
        proj_kernel,
        out_shape=jax.ShapeDtypeStruct((B, V), jnp.float32),
        grid=grid,
        in_specs=[
            pl.BlockSpec((B, H), lambda j: (0, 0), pipeline_mode=resident),
            pl.BlockSpec((H, tn), lambda j: (0, j)),     # streamed, 2-deep
            pl.BlockSpec((1, tn), lambda j: (0, j)),
        ],
        out_specs=pl.BlockSpec((B, tn), lambda j: (0, j)),
        cost_estimate=proj_cost,
        compiler_params=pltpu.CompilerParams(
            # No constant-index output here, so the vocab sweep can be split
            # across TensorCores (2x on v7x; neutral on v5e/v6e).
            dimension_semantics=("parallel",),
            vmem_limit_bytes=_vmem_limit_bytes(proj_vmem)),
    )(*proj_operands)

    return output, h_new, None


# --------------------------------------------------------------------------
# Init + pure-JAX reference
# --------------------------------------------------------------------------

def init_params(key, vocab_size, hidden_size):
    """Parameters in the original PyTorch layout (Embedding / GRUCell / Linear)."""
    ks = jax.random.split(key, 7)
    scale = 1.0 / np.sqrt(hidden_size)
    return {
        "embedding": jax.random.normal(ks[0], (vocab_size, hidden_size), jnp.float32),
        "w_ih": jax.random.uniform(ks[1], (3 * hidden_size, hidden_size),
                                   jnp.float32, -scale, scale),
        "w_hh": jax.random.uniform(ks[2], (3 * hidden_size, hidden_size),
                                   jnp.float32, -scale, scale),
        "b_ih": jax.random.uniform(ks[3], (3 * hidden_size,), jnp.float32, -scale, scale),
        "b_hh": jax.random.uniform(ks[4], (3 * hidden_size,), jnp.float32, -scale, scale),
        "w_out": jax.random.uniform(ks[5], (vocab_size, hidden_size),
                                    jnp.float32, -scale, scale),
        "b_out": jax.random.uniform(ks[6], (vocab_size,), jnp.float32, -scale, scale),
    }


def reference_forward(x, h_prev, prepared):
    """Pure-JAX reference mirroring the kernels' dtype choices."""
    H = h_prev.shape[1]
    Hp = prepared["b_i3"].shape[1] // 3
    hp = jax.lax.Precision.HIGHEST
    enc = prepared["embedding"][x[:, 0]]
    w_i3 = prepared["w_i3"].astype(jnp.float32)
    w_h3 = prepared["w_h3"].astype(jnp.float32)
    gi = jnp.dot(enc, w_i3, precision=hp) + prepared["b_i3"]
    gh = jnp.dot(h_prev, w_h3, precision=hp) + prepared["b_h3"]
    r = jax.nn.sigmoid(gi[:, :Hp] + gh[:, :Hp])
    z = jax.nn.sigmoid(gi[:, Hp:2 * Hp] + gh[:, Hp:2 * Hp])
    n = jnp.tanh(gi[:, 2 * Hp:] + r * gh[:, 2 * Hp:])
    h_new = (1.0 - z[:, :H]) * n[:, :H] + z[:, :H] * h_prev
    # Projection uses a bf16-rounded LHS and bf16-stored weights (f32 accum).
    h_lhs = h_new.astype(jnp.bfloat16).astype(jnp.float32)
    w_out = prepared["w_out"].astype(jnp.float32)
    output = jnp.dot(h_lhs, w_out, precision=hp) + prepared["b_out"]
    return output, h_new


# --------------------------------------------------------------------------
# Demo / self-test
# --------------------------------------------------------------------------

if __name__ == "__main__":
    vocab_size, hidden_size, batch = 2048, 128, 8   # H multiple of 128 -> lane-aligned gates

    key = jax.random.PRNGKey(0)
    k_params, k_x, k_h = jax.random.split(key, 3)

    raw_params = init_params(k_params, vocab_size, hidden_size)
    params = prepare_params(raw_params)

    x = jax.random.randint(k_x, (batch, 1), 0, vocab_size, dtype=jnp.int32)
    h_prev = jax.random.normal(k_h, (batch, hidden_size), jnp.float32)

    ref_out, ref_h = reference_forward(x, h_prev, params)

    # tn=512 exercises the streamed, "parallel" vocab sweep (grid of 4 tiles).
    output, h_new, attn = no_attention_decoder_forward(x, h_prev, params, tn=512)
    jax.block_until_ready((output, h_new))

    np.testing.assert_allclose(np.asarray(output), np.asarray(ref_out),
                               rtol=2e-3, atol=2e-3)
    np.testing.assert_allclose(np.asarray(h_new), np.asarray(ref_h),
                               rtol=1e-3, atol=1e-3)
    assert output.shape == (batch, vocab_size)
    assert h_new.shape == (batch, hidden_size)
    assert attn is None

    print("KERNEL_OK")
</pallas_src>

<mosaic_0001>
module attributes {stable_mosaic.version = 11 : i64} {
  func.func @gru_kernel(%arg0: i32, %arg1: memref<8x128xf32, #tpu.memory_space<vmem>>, %arg2: memref<8x128xf32, #tpu.memory_space<vmem>>, %arg3: memref<128x384xf32, #tpu.memory_space<vmem>>, %arg4: memref<128x384xf32, #tpu.memory_space<vmem>>, %arg5: memref<1x384xf32, #tpu.memory_space<vmem>>, %arg6: memref<1x384xf32, #tpu.memory_space<vmem>>, %arg7: memref<8x128xf32, #tpu.memory_space<vmem>>, %arg8: memref<8x128xbf16, #tpu.memory_space<vmem>>) attributes {dimension_semantics = [#tpu.dimension_semantics<arbitrary>], iteration_bounds = array<i64: 1>, scalar_prefetch = 0 : i64, scratch_operands = 0 : i64, tpu.core_type = #tpu.core_type<tc>, window_params = [{pipeline_mode = #tpu.pipeline_mode<synchronous>, transform_indices = @transform_0, window_bounds = array<i64: 8, 128>}, {pipeline_mode = #tpu.pipeline_mode<synchronous>, transform_indices = @transform_1, window_bounds = array<i64: 8, 128>}, {pipeline_mode = #tpu.pipeline_mode<synchronous>, transform_indices = @transform_2, window_bounds = array<i64: 128, 384>}, {pipeline_mode = #tpu.pipeline_mode<synchronous>, transform_indices = @transform_3, window_bounds = array<i64: 128, 384>}, {pipeline_mode = #tpu.pipeline_mode<synchronous>, transform_indices = @transform_4, window_bounds = array<i64: 1, 384>}, {pipeline_mode = #tpu.pipeline_mode<synchronous>, transform_indices = @transform_5, window_bounds = array<i64: 1, 384>}, {pipeline_mode = #tpu.pipeline_mode<synchronous>, transform_indices = @transform_6, window_bounds = array<i64: 8, 128>}, {pipeline_mode = #tpu.pipeline_mode<synchronous>, transform_indices = @transform_7, window_bounds = array<i64: 8, 128>}]} {
    %c0 = arith.constant 0 : index
    %c0_0 = arith.constant 0 : index
    %0 = vector.load %arg1[%c0, %c0_0] : memref<8x128xf32, #tpu.memory_space<vmem>>, vector<8x128xf32>
    %c0_1 = arith.constant 0 : index
    %c0_2 = arith.constant 0 : index
    %1 = vector.load %arg2[%c0_1, %c0_2] : memref<8x128xf32, #tpu.memory_space<vmem>>, vector<8x128xf32>
    %c0_3 = arith.constant 0 : index
    %c0_4 = arith.constant 0 : index
    %2 = vector.load %arg3[%c0_3, %c0_4] : memref<128x384xf32, #tpu.memory_space<vmem>>, vector<128x384xf32>
    %cst = arith.constant dense<0.000000e+00> : vector<8x384xf32>
    %3 = tpu.matmul %0, %2, %cst {dimension_numbers = #tpu.dot_dimension_numbers<[1], [0], [0], [1], [0, 0, 1, 1], [], []>} : vector<8x128xf32>, vector<128x384xf32>, vector<8x384xf32> -> vector<8x384xf32>
    %c0_5 = arith.constant 0 : index
    %c0_6 = arith.constant 0 : index
    %4 = vector.load %arg5[%c0_5, %c0_6] : memref<1x384xf32, #tpu.memory_space<vmem>>, vector<1x384xf32>
    %5 = vector.broadcast %4 : vector<1x384xf32> to vector<8x384xf32>
    %6 = arith.addf %3, %5 : vector<8x384xf32>
    %c0_7 = arith.constant 0 : index
    %c0_8 = arith.constant 0 : index
    %7 = vector.load %arg4[%c0_7, %c0_8] : memref<128x384xf32, #tpu.memory_space<vmem>>, vector<128x384xf32>
    %cst_9 = arith.constant dense<0.000000e+00> : vector<8x384xf32>
    %8 = tpu.matmul %1, %7, %cst_9 {dimension_numbers = #tpu.dot_dimension_numbers<[1], [0], [0], [1], [0, 0, 1, 1], [], []>} : vector<8x128xf32>, vector<128x384xf32>, vector<8x384xf32> -> vector<8x384xf32>
    %c0_10 = arith.constant 0 : index
    %c0_11 = arith.constant 0 : index
    %9 = vector.load %arg6[%c0_10, %c0_11] : memref<1x384xf32, #tpu.memory_space<vmem>>, vector<1x384xf32>
    %10 = vector.broadcast %9 : vector<1x384xf32> to vector<8x384xf32>
    %11 = arith.addf %8, %10 : vector<8x384xf32>
    %12 = vector.extract_strided_slice %6 {offsets = [0, 0], sizes = [8, 128], strides = [1, 1]} : vector<8x384xf32> to vector<8x128xf32>
    %13 = vector.extract_strided_slice %11 {offsets = [0, 0], sizes = [8, 128], strides = [1, 1]} : vector<8x384xf32> to vector<8x128xf32>
    %14 = arith.addf %12, %13 : vector<8x128xf32>
    %15 = arith.negf %14 : vector<8x128xf32>
    %16 = math.exp %15 : vector<8x128xf32>
    %cst_12 = arith.constant 1.000000e+00 : f32
    %17 = vector.broadcast %cst_12 : f32 to vector<8x128xf32>
    %18 = arith.addf %17, %16 : vector<8x128xf32>
    %19 = arith.divf %17, %18 : vector<8x128xf32>
    %20 = vector.extract_strided_slice %6 {offsets = [0, 128], sizes = [8, 128], strides = [1, 1]} : vector<8x384xf32> to vector<8x128xf32>
    %21 = vector.extract_strided_slice %11 {offsets = [0, 128], sizes = [8, 128], strides = [1, 1]} : vector<8x384xf32> to vector<8x128xf32>
    %22 = arith.addf %20, %21 : vector<8x128xf32>
    %23 = arith.negf %22 : vector<8x128xf32>
    %24 = math.exp %23 : vector<8x128xf32>
    %cst_13 = arith.constant 1.000000e+00 : f32
    %25 = vector.broadcast %cst_13 : f32 to vector<8x128xf32>
    %26 = arith.addf %25, %24 : vector<8x128xf32>
    %27 = arith.divf %25, %26 : vector<8x128xf32>
    %28 = vector.extract_strided_slice %6 {offsets = [0, 256], sizes = [8, 128], strides = [1, 1]} : vector<8x384xf32> to vector<8x128xf32>
    %29 = vector.extract_strided_slice %11 {offsets = [0, 256], sizes = [8, 128], strides = [1, 1]} : vector<8x384xf32> to vector<8x128xf32>
    %30 = arith.mulf %19, %29 : vector<8x128xf32>
    %31 = arith.addf %28, %30 : vector<8x128xf32>
    %32 = math.tanh %31 : vector<8x128xf32>
    %cst_14 = arith.constant 1.000000e+00 : f32
    %33 = vector.broadcast %cst_14 : f32 to vector<8x128xf32>
    %34 = arith.subf %33, %27 : vector<8x128xf32>
    %35 = arith.mulf %34, %32 : vector<8x128xf32>
    %36 = arith.mulf %27, %1 : vector<8x128xf32>
    %37 = arith.addf %35, %36 : vector<8x128xf32>
    %c0_15 = arith.constant 0 : index
    %c0_16 = arith.constant 0 : index
    %38 = vector.load %arg7[%c0_15, %c0_16] : memref<8x128xf32, #tpu.memory_space<vmem>>, vector<8x128xf32>
    tpu.vector_store %arg7[%c0_15, %c0_16], %37 {strides = array<i32>} : memref<8x128xf32, #tpu.memory_space<vmem>>, vector<8x128xf32>,
    %39 = arith.truncf %37 : vector<8x128xf32> to vector<8x128xbf16>
    %c0_17 = arith.constant 0 : index
    %c0_18 = arith.constant 0 : index
    %40 = vector.load %arg8[%c0_17, %c0_18] : memref<8x128xbf16, #tpu.memory_space<vmem>>, vector<8x128xbf16>
    tpu.vector_store %arg8[%c0_17, %c0_18], %39 {strides = array<i32>} : memref<8x128xbf16, #tpu.memory_space<vmem>>, vector<8x128xbf16>,
    return
  }
  func.func @transform_0(%arg0: i32) -> (i32, i32) {
    %c0_i32 = arith.constant 0 : i32
    %c0_i32_0 = arith.constant 0 : i32
    %c0_i32_1 = arith.constant 0 : i32
    return %c0_i32, %c0_i32_0 : i32, i32
  }
  func.func @transform_1(%arg0: i32) -> (i32, i32) {
    %c0_i32 = arith.constant 0 : i32
    %c0_i32_0 = arith.constant 0 : i32
    %c0_i32_1 = arith.constant 0 : i32
    return %c0_i32, %c0_i32_0 : i32, i32
  }
  func.func @transform_2(%arg0: i32) -> (i32, i32) {
    %c0_i32 = arith.constant 0 : i32
    %c0_i32_0 = arith.constant 0 : i32
    %c0_i32_1 = arith.constant 0 : i32
    return %c0_i32, %c0_i32_0 : i32, i32
  }
  func.func @transform_3(%arg0: i32) -> (i32, i32) {
    %c0_i32 = arith.constant 0 : i32
    %c0_i32_0 = arith.constant 0 : i32
    %c0_i32_1 = arith.constant 0 : i32
    return %c0_i32, %c0_i32_0 : i32, i32
  }
  func.func @transform_4(%arg0: i32) -> (i32, i32) {
    %c0_i32 = arith.constant 0 : i32
    %c0_i32_0 = arith.constant 0 : i32
    %c0_i32_1 = arith.constant 0 : i32
    return %c0_i32, %c0_i32_0 : i32, i32
  }
  func.func @transform_5(%arg0: i32) -> (i32, i32) {
    %c0_i32 = arith.constant 0 : i32
    %c0_i32_0 = arith.constant 0 : i32
    %c0_i32_1 = arith.constant 0 : i32
    return %c0_i32, %c0_i32_0 : i32, i32
  }
  func.func @transform_6(%arg0: i32) -> (i32, i32) {
    %c0_i32 = arith.constant 0 : i32
    %c0_i32_0 = arith.constant 0 : i32
    %c0_i32_1 = arith.constant 0 : i32
    return %c0_i32, %c0_i32_0 : i32, i32
  }
  func.func @transform_7(%arg0: i32) -> (i32, i32) {
    %c0_i32 = arith.constant 0 : i32
    %c0_i32_0 = arith.constant 0 : i32
    %c0_i32_1 = arith.constant 0 : i32
    return %c0_i32, %c0_i32_0 : i32, i32
  }
}

</mosaic_0001>

<bundles_post_ra>
// kernel: tpu_custom_call.1
= control target key start
LH: loop header
LB: loop body
LE: loop exit
PB: predicated region body
PF: predicated region fallthrough
CT: control target
= control target key end

     0   :  { %13 = vsyncpa [#allocation3], 0  ;;  %s701_s0 = inlined_call_operand.hbm [shape: f32[8,128], index: 0, kind: input, shape index: {}]   ;;  %s702_s1 = inlined_call_operand.hbm [shape: f32[8,128], index: 1, kind: input, shape index: {}]   ;;  %s703_s2 = inlined_call_operand.hbm [shape: f32[128,384], index: 2, kind: input, shape index: {}]   ;;  %s704_s3 = inlined_call_operand.hbm [shape: f32[128,384], index: 3, kind: input, shape index: {}]   ;;  %s705_s4 = inlined_call_operand.vmem [shape: f32[1,384], index: 4, kind: input, shape index: {}]   ;;  %s706_s5 = inlined_call_operand.hbm [shape: f32[1,384], index: 5, kind: input, shape index: {}]   ;;  %s707_s6 = inlined_call_operand.hbm [shape: f32[8,128], index: 6, kind: output, shape index: {0}]   ;;  %s708_s7 = inlined_call_operand.hbm [shape: bf16[8,128], index: 7, kind: output, shape index: {1}]  }
   0x1   :  { %14 = vsyncpa [#allocation6], 0 }
   0x2   :  { %15 = vsyncpa [#allocation9], 0 }
   0x3   :  { %16 = vsyncpa [#allocation4], 0  ;;  %s34_s26 = sshll.u32 %s702_s1, 4  ;;  %s35_s26 = int_to_ptr.hbm [resolvable:$true] %s34_s26 }
   0x4   :  { %17 = vsyncpa [#allocation13], 0  ;;  %s617_s27 = smov [#allocation5]   ;;  %s57_s8 = sshll.u32 %s704_s3, 4  ;;  %s58_s8 = int_to_ptr.hbm [resolvable:$true] %s57_s8 }
   0x5   :  { %s36_s28 = sshll.u32 %s617_s27, 4  ;;  %s618_s9 = smov [#allocation8]   ;;  %s37_s28 = int_to_ptr.vmem [resolvable:$true] %s36_s28 }
   0x6   :  { %39 = dma.hbm_to_vmem [thread:$0]  %s35_s26, 128, %s37_s28, [#allocation6]  }
   0x7   :  { %s59_s10 = sshll.u32 %s618_s9, 4  ;;  %s23_s13 = sshll.u32 %s701_s0, 4  ;;  %s60_s10 = int_to_ptr.vmem [resolvable:$true] %s59_s10  ;;  %s24_s13 = int_to_ptr.hbm [resolvable:$true] %s23_s13 }
   0x8   :  { %s619_s1 = smov 384   ;;  %s620_s14 = smov 24  }
   0x9   :  { %65 = dma.hbm_to_vmem [thread:$0]  %s58_s8, 6144, %s60_s10, [#allocation9], %s619_s1, %s619_s1, %s620_s14  }
   0xa   :  { %s44_s17 = sshll.u32 %s703_s2, 4  ;;  %s621_s18 = smov [#allocation2]   ;;  %s45_s17 = int_to_ptr.hbm [resolvable:$true] %s44_s17 }
   0xb   :  { %s25_s19 = sshll.u32 %s621_s18, 4  ;;  %s622_s3 = smov [#allocation7]   ;;  %s26_s19 = int_to_ptr.vmem [resolvable:$true] %s25_s19 }
   0xc   :  { %28 = dma.hbm_to_vmem [thread:$0]  %s24_s13, 128, %s26_s19, [#allocation3]  }
   0xd   :  { %s46_s20 = sshll.u32 %s622_s3, 4  ;;  %s73_s0 = sshll.u32 %s706_s5, 4  ;;  %s47_s20 = int_to_ptr.vmem [resolvable:$true] %s46_s20  ;;  %s74_s0 = int_to_ptr.hbm [resolvable:$true] %s73_s0 }
   0xe   :  { %52 = dma.hbm_to_vmem [thread:$0]  %s45_s17, 6144, %s47_s20, [#allocation6], %s619_s1, %s619_s1, %s620_s14  }
   0xf   :  { %s623_s23 = smov [#allocation10]  }
  0x10   :  { %s75_s24 = sshll.u32 %s623_s23, 4  ;;  %s76_s24 = int_to_ptr.vmem [resolvable:$true] %s75_s24 }
  0x11   :  { %78 = dma.hbm_to_vmem [thread:$0]  %s74_s0, 48, %s76_s24, [#allocation9]  }
  0x12   :  { %607 = dma.done.wait [#allocation3], 128  }
  0x13   :  { %608 = vsyncadd [#allocation3], 4294967168 }
  0x14   :  { %609 = dma.done.wait [#allocation6], 6272  }
  0x15   :  { %610 = vsyncadd [#allocation6], 4294961024 }
  0x16   :  { %611 = dma.done.wait [#allocation9], 6192  }
  0x17   :  { %612 = vsyncadd [#allocation9], 4294961104  ;;  %v146_v0 = vld [vmem:[#allocation7 + $0x168] sm:$0xff]  ;;  %v143_v1 = vld [vmem:[#allocation7 + $0x150] sm:$0xff]  ;;  %s390_s28 = sshll.u32 %s707_s6, 4  ;;  %s625_s29 = smov [#allocation12]   ;;  %s391_s28 = int_to_ptr.hbm [resolvable:$true] %s390_s28 }
  0x18   :  { %v262_v2 = vld [vmem:[#allocation8 + $0x168] sm:$0xff]  ;;  %157 = vmatpush.msra.mxu0 %v146_v0  ;;  %v259_v3 = vld [vmem:[#allocation8 + $0x150] sm:$0xff]  ;;  %v140_v4 = vld [vmem:[#allocation7 + $0x138] sm:$0xff]  ;;  %s399_s30 = sshll.u32 %s625_s29, 4  ;;  %s401_s10 = sshll.u32 %s708_s7, 4  ;;  %s400_s30 = int_to_ptr.vmem [resolvable:$true] %s399_s30  ;;  %s402_s10 = int_to_ptr.hbm [resolvable:$true] %s401_s10 }
  0x19   :  { %273 = vmatpush.msra.mxu3 %v262_v2  ;;  %v256_v5 = vld [vmem:[#allocation8 + $0x138] sm:$0xff]  ;;  %v147_v6 = vld [vmem:[#allocation7 + $0x170] sm:$0xff]  ;;  %v137_v8 = vld [vmem:[#allocation7 + $0x120] sm:$0xff] }
  0x1a   :  { %158 = vmatpush.msra.mxu0 %v143_v1  ;;  %v144_v7 = vld [vmem:[#allocation7 + $0x158] sm:$0xff]  ;;  %177 = vmatpush.msra.mxu1 %v147_v6  ;;  %v253_v9 = vld [vmem:[#allocation8 + $0x120] sm:$0xff]  ;;  %v134_v11 = vld [vmem:[#allocation7 + $0x108] sm:$0xff] }
  0x1b   :  { %274 = vmatpush.msra.mxu3 %v259_v3  ;;  %v141_v10 = vld [vmem:[#allocation7 + $0x140] sm:$0xff]  ;;  %v250_v12 = vld [vmem:[#allocation8 + $0x108] sm:$0xff]  ;;  %v131_v14 = vld [vmem:[#allocation7 + $0xf0] sm:$0xff] }
  0x1c   :  { %159 = vmatpush.msra.mxu0 %v140_v4  ;;  %178 = vmatpush.msra.mxu1 %v144_v7  ;;  %v138_v13 = vld [vmem:[#allocation7 + $0x128] sm:$0xff]  ;;  %v247_v15 = vld [vmem:[#allocation8 + $0xf0] sm:$0xff]  ;;  %v128_v17 = vld [vmem:[#allocation7 + $0xd8] sm:$0xff] }
  0x1d   :  { %275 = vmatpush.msra.mxu3 %v256_v5  ;;  %v135_v16 = vld [vmem:[#allocation7 + $0x110] sm:$0xff]  ;;  %v244_v18 = vld [vmem:[#allocation8 + $0xd8] sm:$0xff]  ;;  %v125_v20 = vld [vmem:[#allocation7 + $0xc0] sm:$0xff] }
  0x1e   :  { %160 = vmatpush.msra.mxu0 %v137_v8  ;;  %179 = vmatpush.msra.mxu1 %v141_v10  ;;  %v132_v19 = vld [vmem:[#allocation7 + $0xf8] sm:$0xff]  ;;  %v241_v21 = vld [vmem:[#allocation8 + $0xc0] sm:$0xff]  ;;  %v122_v23 = vld [vmem:[#allocation7 + $0xa8] sm:$0xff] }
  0x1f   :  { %276 = vmatpush.msra.mxu3 %v253_v9  ;;  %v129_v22 = vld [vmem:[#allocation7 + $0xe0] sm:$0xff]  ;;  %v238_v24 = vld [vmem:[#allocation8 + $0xa8] sm:$0xff]  ;;  %v119_v26 = vld [vmem:[#allocation7 + $0x90] sm:$0xff] }
  0x20   :  { %161 = vmatpush.msra.mxu0 %v134_v11  ;;  %180 = vmatpush.msra.mxu1 %v138_v13  ;;  %v126_v25 = vld [vmem:[#allocation7 + $0xc8] sm:$0xff]  ;;  %v235_v27 = vld [vmem:[#allocation8 + $0x90] sm:$0xff]  ;;  %v148_v28 = vld [vmem:[#allocation7 + $0x178] sm:$0xff] }
  0x21   :  { %277 = vmatpush.msra.mxu3 %v250_v12  ;;  %v123_v29 = vld [vmem:[#allocation7 + $0xb0] sm:$0xff]  ;;  %v145_v30 = vld [vmem:[#allocation7 + $0x160] sm:$0xff]  ;;  %v116_v31 = vld [vmem:[#allocation7 + $0x78] sm:$0xff]  ;;  %197 = vmatpush.msra.mxu2 %v148_v28 }
  0x22   :  { %162 = vmatpush.msra.mxu0 %v131_v14  ;;  %181 = vmatpush.msra.mxu1 %v135_v16  ;;  %v232_v32 = vld [vmem:[#allocation8 + $0x78] sm:$0xff]  ;;  %v142_v34 = vld [vmem:[#allocation7 + $0x148] sm:$0xff]  ;;  %v113_v35 = vld [vmem:[#allocation7 + $0x60] sm:$0xff] }
  0x23   :  { %278 = vmatpush.msra.mxu3 %v247_v15  ;;  %v120_v33 = vld [vmem:[#allocation7 + $0x98] sm:$0xff]  ;;  %v229_v36 = vld [vmem:[#allocation8 + $0x60] sm:$0xff]  ;;  %198 = vmatpush.msra.mxu2 %v145_v30  ;;  %v139_v38 = vld [vmem:[#allocation7 + $0x130] sm:$0xff] }
  0x24   :  { %163 = vmatpush.msra.mxu0 %v128_v17  ;;  %182 = vmatpush.msra.mxu1 %v132_v19  ;;  %v117_v37 = vld [vmem:[#allocation7 + $0x80] sm:$0xff]  ;;  %v110_v39 = vld [vmem:[#allocation7 + $0x48] sm:$0xff]  ;;  %v136_v42 = vld [vmem:[#allocation7 + $0x118] sm:$0xff] }
  0x25   :  { %279 = vmatpush.msra.mxu3 %v244_v18  ;;  %v226_v40 = vld [vmem:[#allocation8 + $0x48] sm:$0xff]  ;;  %199 = vmatpush.msra.mxu2 %v142_v34  ;;  %v107_v43 = vld [vmem:[#allocation7 + $0x30] sm:$0xff]  ;;  %v133_v46 = vld [vmem:[#allocation7 + $0x100] sm:$0xff] }
  0x26   :  { %164 = vmatpush.msra.mxu0 %v125_v20  ;;  %183 = vmatpush.msra.mxu1 %v129_v22  ;;  %v114_v41 = vld [vmem:[#allocation7 + $0x68] sm:$0xff]  ;;  %v223_v44 = vld [vmem:[#allocation8 + $0x30] sm:$0xff]  ;;  %v104_v47 = vld [vmem:[#allocation7 + $0x18] sm:$0xff] }
  0x27   :  { %280 = vmatpush.msra.mxu3 %v241_v21  ;;  %200 = vmatpush.msra.mxu2 %v139_v38  ;;  %v111_v45 = vld [vmem:[#allocation7 + $0x50] sm:$0xff]  ;;  %v220_v48 = vld [vmem:[#allocation8 + $0x18] sm:$0xff]  ;;  %v130_v50 = vld [vmem:[#allocation7 + $0xe8] sm:$0xff] }
  0x28   :  { %165 = vmatpush.msra.mxu0 %v122_v23  ;;  %184 = vmatpush.msra.mxu1 %v126_v25  ;;  %v108_v49 = vld [vmem:[#allocation7 + $0x38] sm:$0xff]  ;;  %v101_v51 = vld [vmem:[#allocation7] sm:$0xff]  ;;  %v263_v53 = vld [vmem:[#allocation8 + $0x170] sm:$0xff] }
  0x29   :  { %281 = vmatpush.msra.mxu3 %v238_v24  ;;  %201 = vmatpush.msra.mxu2 %v136_v42  ;;  %v217_v52 = vld [vmem:[#allocation8] sm:$0xff]  ;;  %v681_v54 = vld [vmem:[#allocation5] sm:$0xff]  ;;  %v683_v56 = vld [vmem:[#allocation2] sm:$0xff] }
  0x2a   :  { %166 = vmatpush.msra.mxu0 %v119_v26  ;;  %185 = vmatpush.msra.mxu1 %v123_v29  ;;  %v105_v55 = vld [vmem:[#allocation7 + $0x20] sm:$0xff]  ;;  %v260_v57 = vld [vmem:[#allocation8 + $0x158] sm:$0xff]  ;;  %v127_v58 = vld [vmem:[#allocation7 + $0xd0] sm:$0xff] }
  0x2b   :  { %282 = vmatpush.msra.mxu3 %v235_v27  ;;  %202 = vmatpush.msra.mxu2 %v133_v46  ;;  %v102_v59 = vld [vmem:[#allocation7 + $0x8] sm:$0xff]  ;;  %v257_v60 = vld [vmem:[#allocation8 + $0x140] sm:$0xff]  ;;  %v264_v61 = vld [vmem:[#allocation8 + $0x178] sm:$0xff] }
  0x2c   :  { %167 = vmatpush.msra.mxu0 %v116_v31  ;;  %186 = vmatpush.msra.mxu1 %v120_v33  ;;  %v124_v62 = vld [vmem:[#allocation7 + $0xb8] sm:$0xff]  ;;  %v254_v63 = vld [vmem:[#allocation8 + $0x128] sm:$0xff]  ;;  %v261_v0 = vld [vmem:[#allocation8 + $0x160] sm:$0xff] }
  0x2d   :  { %283 = vmatpush.msra.mxu3 %v232_v32  ;;  %203 = vmatpush.msra.mxu2 %v130_v50  ;;  %v121_v1 = vld [vmem:[#allocation7 + $0xa0] sm:$0xff]  ;;  %v251_v2 = vld [vmem:[#allocation8 + $0x110] sm:$0xff]  ;;  %v258_v3 = vld [vmem:[#allocation8 + $0x148] sm:$0xff] }
  0x2e   :  { %168 = vmatpush.msra.mxu0 %v113_v35  ;;  %187 = vmatpush.msra.mxu1 %v117_v37  ;;  %v118_v4 = vld [vmem:[#allocation7 + $0x88] sm:$0xff]  ;;  %v248_v5 = vld [vmem:[#allocation8 + $0xf8] sm:$0xff]  ;;  %v255_v6 = vld [vmem:[#allocation8 + $0x130] sm:$0xff] }
  0x2f   :  { %284 = vmatpush.msra.mxu3 %v229_v36  ;;  %204 = vmatpush.msra.mxu2 %v127_v58  ;;  %v115_v7 = vld [vmem:[#allocation7 + $0x70] sm:$0xff]  ;;  %v245_v8 = vld [vmem:[#allocation8 + $0xe0] sm:$0xff]  ;;  %v252_v9 = vld [vmem:[#allocation8 + $0x118] sm:$0xff] }
  0x30   :  { %169 = vmatpush.msra.mxu0 %v110_v39  ;;  %188 = vmatpush.msra.mxu1 %v114_v41  ;;  %v112_v10 = vld [vmem:[#allocation7 + $0x58] sm:$0xff]  ;;  %v242_v11 = vld [vmem:[#allocation8 + $0xc8] sm:$0xff]  ;;  %v249_v12 = vld [vmem:[#allocation8 + $0x100] sm:$0xff] }
  0x31   :  { %285 = vmatpush.msra.mxu3 %v226_v40  ;;  %205 = vmatpush.msra.mxu2 %v124_v62  ;;  %v109_v13 = vld [vmem:[#allocation7 + $0x40] sm:$0xff]  ;;  %v239_v14 = vld [vmem:[#allocation8 + $0xb0] sm:$0xff]  ;;  %v246_v15 = vld [vmem:[#allocation8 + $0xe8] sm:$0xff] }
  0x32   :  { %170 = vmatpush.msra.mxu0 %v107_v43  ;;  %189 = vmatpush.msra.mxu1 %v111_v45  ;;  %v106_v16 = vld [vmem:[#allocation7 + $0x28] sm:$0xff]  ;;  %v236_v17 = vld [vmem:[#allocation8 + $0x98] sm:$0xff]  ;;  %v243_v18 = vld [vmem:[#allocation8 + $0xd0] sm:$0xff] }
  0x33   :  { %286 = vmatpush.msra.mxu3 %v223_v44  ;;  %206 = vmatpush.msra.mxu2 %v121_v1  ;;  %v103_v19 = vld [vmem:[#allocation7 + $0x10] sm:$0xff]  ;;  %v233_v20 = vld [vmem:[#allocation8 + $0x80] sm:$0xff]  ;;  %v240_v21 = vld [vmem:[#allocation8 + $0xb8] sm:$0xff] }
  0x34   :  { %171 = vmatpush.msra.mxu0 %v104_v47  ;;  %190 = vmatpush.msra.mxu1 %v108_v49  ;;  %v230_v22 = vld [vmem:[#allocation8 + $0x68] sm:$0xff]  ;;  %v237_v23 = vld [vmem:[#allocation8 + $0xa0] sm:$0xff]  ;;  %v227_v24 = vld [vmem:[#allocation8 + $0x50] sm:$0xff] }
  0x35   :  { %287 = vmatpush.msra.mxu3 %v220_v48  ;;  %207 = vmatpush.msra.mxu2 %v118_v4  ;;  %v234_v25 = vld [vmem:[#allocation8 + $0x88] sm:$0xff]  ;;  %v224_v26 = vld [vmem:[#allocation8 + $0x38] sm:$0xff]  ;;  %v231_v27 = vld [vmem:[#allocation8 + $0x70] sm:$0xff] }
  0x36   :  { %172 = vmatpush.msra.mxu0 %v101_v51  ;;  %191 = vmatpush.msra.mxu1 %v105_v55  ;;  %v221_v28 = vld [vmem:[#allocation8 + $0x20] sm:$0xff]  ;;  %v228_v29 = vld [vmem:[#allocation8 + $0x58] sm:$0xff]  ;;  %v218_v30 = vld [vmem:[#allocation8 + $0x8] sm:$0xff] }
  0x37   :  { %288 = vmatpush.msra.mxu3 %v217_v52  ;;  %173 = vmatmul.f32.vlgmr.msra.gmra.mxu0 %v683_v56  ;;  %v225_v31 = vld [vmem:[#allocation8 + $0x40] sm:$0xff]  ;;  %v222_v32 = vld [vmem:[#allocation8 + $0x28] sm:$0xff]  ;;  %v219_v33 = vld [vmem:[#allocation8 + $0x10] sm:$0xff] }
  0x38   :  { %293 = vmatpush.msrb.mxu0 %v263_v53  ;;  %289 = vmatmul.f32.vlgmr.msra.gmra.mxu3 %v681_v54  ;;  %v149_v34 = vld [vmem:[%s705_s4] sm:$0x7]  ;;  %v265_v35 = vld [vmem:[#allocation10] sm:$0x7]  ;;  %s624_s4 = smov [#allocation11]  }
  0x39   :  { %192 = vmatpush.msra.mxu1 %v102_v59  ;;  %208 = vmatpush.msra.mxu2 %v115_v7  ;;  %v151_v36 = vperm.slane %v149_v34, 0  ;;  %v267_v38 = vperm.slane %v265_v35, 0  ;;  %v152_v46 = vperm.slane %v149_v34, 1  ;;  %v268_v49 = vperm.slane %v265_v35, 1  ;;  %s388_s25 = sshll.u32 %s624_s4, 4  ;;  %s389_s25 = int_to_ptr.vmem [resolvable:$true] %s388_s25 }
  0x3a   :  { %294 = vmatpush.msrb.mxu0 %v260_v57  ;;  %193 = vmatmul.f32.vlgmr.msra.gmra.mxu1 %v683_v56  ;;  %v269_v62 = vperm.slane %v265_v35, 2 }
  0x3b   :  { %313 = vmatpush.msrb.mxu1 %v264_v61  ;;  %209 = vmatpush.msra.mxu2 %v112_v10 }
  0x3c   :  { %295 = vmatpush.msrb.mxu0 %v257_v60 }
  0x3d   :  { %314 = vmatpush.msrb.mxu1 %v261_v0  ;;  %210 = vmatpush.msra.mxu2 %v109_v13 }
  0x3e   :  { %296 = vmatpush.msrb.mxu0 %v254_v63 }
  0x3f   :  { %315 = vmatpush.msrb.mxu1 %v258_v3  ;;  %211 = vmatpush.msra.mxu2 %v106_v16 }
  0x40   :  { %297 = vmatpush.msrb.mxu0 %v251_v2 }
  0x41   :  { %316 = vmatpush.msrb.mxu1 %v255_v6  ;;  %212 = vmatpush.msra.mxu2 %v103_v19 }
  0x42   :  { %298 = vmatpush.msrb.mxu0 %v248_v5  ;;  %213 = vmatmul.f32.vlgmr.msra.gmra.mxu2 %v683_v56  ;;  %v153_v5 = vperm.slane %v149_v34, 2 }
  0x43   :  { %317 = vmatpush.msrb.mxu1 %v252_v9 }
  0x44   :  { %299 = vmatpush.msrb.mxu0 %v245_v8 }
  0x45   :  { %318 = vmatpush.msrb.mxu1 %v249_v12 }
  0x46   :  { %300 = vmatpush.msrb.mxu0 %v242_v11 }
  0x47   :  { %319 = vmatpush.msrb.mxu1 %v246_v15 }
  0x48   :  { %301 = vmatpush.msrb.mxu0 %v239_v14 }
  0x49   :  { %320 = vmatpush.msrb.mxu1 %v243_v18 }
  0x4a   :  { %302 = vmatpush.msrb.mxu0 %v236_v17 }
  0x4b   :  { %321 = vmatpush.msrb.mxu1 %v240_v21 }
  0x4c   :  { %303 = vmatpush.msrb.mxu0 %v233_v20 }
  0x4d   :  { %322 = vmatpush.msrb.mxu1 %v237_v23 }
  0x4e   :  { %304 = vmatpush.msrb.mxu0 %v230_v22 }
  0x4f   :  { %323 = vmatpush.msrb.mxu1 %v234_v25 }
  0x50   :  { %305 = vmatpush.msrb.mxu0 %v227_v24 }
  0x51   :  { %324 = vmatpush.msrb.mxu1 %v231_v27 }
  0x52   :  { %306 = vmatpush.msrb.mxu0 %v224_v26 }
  0x53   :  { %325 = vmatpush.msrb.mxu1 %v228_v29 }
  0x54   :  { %307 = vmatpush.msrb.mxu0 %v221_v28 }
  0x55   :  { %326 = vmatpush.msrb.mxu1 %v225_v31 }
  0x56   :  { %308 = vmatpush.msrb.mxu0 %v218_v30 }
  0x57   :  { %309 = vmatmul.f32.vlgmr.msrb.gmra.mxu0 %v681_v54  ;;  %327 = vmatpush.msrb.mxu1 %v222_v32 }
  0x59   :  { %328 = vmatpush.msrb.mxu1 %v219_v33 }
  0x5a   :  { %329 = vmatmul.f32.vlgmr.msrb.gmra.mxu1 %v681_v54 }
  0xb4   :  { %v174_v37 = vpop.f32.mrf.mxu0 }
  0xb5   :  { %v175_v39 = vadd.f32 %v174_v37, %v151_v36 }
  0xb7   :  { %v194_v47 = vpop.f32.mrf.mxu1 }
  0xb8   :  { %v195_v51 = vadd.f32 %v194_v47, %v152_v46 }
  0xbb   :  { %v290_v40 = vpop.f32.mrf.mxu3 }
  0xbc   :  { %v291_v41 = vadd.f32 %v290_v40, %v267_v38 }
  0xbe   :  { %v333_v42 = vadd.f32 %v291_v41, %v175_v39 }
  0xc0   :  { %v418_v43 = vmul.f32 -1.442695, %v333_v42 }
  0xc2   :  { %429 = vpow2.f32 %v418_v43 }
  0xc5   :  { %v214_v7 = vpop.f32.mrf.mxu2 }
  0xc6   :  { %v215_v9 = vadd.f32 %v214_v7, %v153_v5 }
  0xc8   :  { %v430_v44 = vpop.eup %429 }
  0xc9   :  { %v337_v45 = vadd.f32 1.0, %v430_v44 }
  0xcb   :  { %431 = vrcp.f32 %v337_v45  ;;  %vm343_vm0 = vweird.f32 %v337_v45  ;;  %v349_v59 = vand.u32 2147483648, %v337_v45  ;;  %v347_v61 = vand.u32 2147483647, %v337_v45 }
  0xcd   :  { %v350_v1 = vor.u32 1.1754944e-38, %v349_v59  ;;  %vm348_vm3 = vcmp.eq.f32.partialorder %v347_v61, 8.507059e+37 }
  0xd1   :  { %v432_v48 = vpop.eup %431 }
  0xd2   :  { %v339_v50 = vmul.f32 %v432_v48, %v337_v45  ;;  %vm344_vm1 = vweird.f32 %v432_v48 }
  0xd3   :  { %vm345_vm2 = vmor %vm343_vm0, %vm344_vm1 }
  0xd4   :  { %v310_v52 = vpop.f32.mrf.mxu0  ;;  %v340_v55 = vsub.f32 1.0, %v339_v50 }
  0xd5   :  { %v311_v53 = vadd.f32 %v310_v52, %v268_v49 }
  0xd6   :  { %v341_v58 = vmul.f32 %v432_v48, %v340_v55 }
  0xd7   :  { %v353_v56 = vadd.f32 %v311_v53, %v195_v51  ;;  %v330_v0 = vpop.f32.mrf.mxu1 }
  0xd8   :  { %v342_v60 = vadd.f32 %v432_v48, %v341_v58  ;;  %v331_v4 = vadd.f32 %v330_v0, %v269_v62 }
  0xd9   :  { %v419_v57 = vmul.f32 -1.442695, %v353_v56 }
  0xda   :  { %v346_v3 = vsel %vm345_vm2, %v432_v48, %v342_v60 }
  0xdb   :  { %433 = vpow2.f32 %v419_v57  ;;  %v351_v6 = vsel %vm348_vm3, %v350_v1, %v346_v3 }
  0xdc   :  { %v373_v8 = vmul.f32 %v351_v6, %v331_v4 }
  0xde   :  { %v374_v12 = vadd.f32 %v373_v8, %v215_v9 }
  0xe1   :  { %v434_v63 = vpop.eup %433 }
  0xe2   :  { %v357_v2 = vadd.f32 1.0, %v434_v63 }
  0xe4   :  { %435 = vrcp.f32 %v357_v2  ;;  %v369_v14 = vand.u32 2147483648, %v357_v2  ;;  %v367_v16 = vand.u32 2147483647, %v357_v2  ;;  %vm363_vm5 = vweird.f32 %v357_v2 }
  0xe5   :  { %437 = vtanh.f32 %v374_v12 }
  0xe6   :  { %v370_v18 = vor.u32 1.1754944e-38, %v369_v14  ;;  %vm368_vm7 = vcmp.eq.f32.partialorder %v367_v16, 8.507059e+37 }
  0xea   :  { %v436_v10 = vpop.eup %435 }
  0xeb   :  { %v359_v11 = vmul.f32 %v436_v10, %v357_v2  ;;  %vm364_vm4 = vweird.f32 %v436_v10  ;;  %v438_v22 = vpop.eup %437 }
  0xec   :  { %vm365_vm6 = vmor %vm363_vm5, %vm364_vm4 }
  0xed   :  { %v360_v13 = vsub.f32 1.0, %v359_v11 }
  0xef   :  { %v361_v15 = vmul.f32 %v436_v10, %v360_v13 }
  0xf1   :  { %v362_v17 = vadd.f32 %v436_v10, %v361_v15 }
  0xf3   :  { %v366_v19 = vsel %vm365_vm6, %v436_v10, %v362_v17 }
  0xf4   :  { %v371_v20 = vsel %vm368_vm7, %v370_v18, %v366_v19 }
  0xf5   :  { %v376_v21 = vsub.f32 1.0, %v371_v20  ;;  %v378_v24 = vmul.f32 %v371_v20, %v681_v54 }
  0xf7   :  { %v377_v23 = vmul.f32 %v438_v22, %v376_v21 }
  0xf9   :  { %v379_v25 = vadd.f32 %v378_v24, %v377_v23 }
  0xfb   :  { %380 = vst [vmem:[#allocation11] sm:$0xff] %v379_v25  ;;  %v381_v26 = vpack.c.bf16 %v379_v25, %v379_v25 }
  0xfc   :  { %393 = dma.vmem_to_hbm [thread:$0]  %s389_s25, 128, %s391_s28, [#allocation4]  }
  0xfd   :  { %382 = vst [vmem:[#allocation12] sm:$0xf] %v381_v26 }
  0xfe   :  { %404 = dma.vmem_to_hbm [thread:$0]  %s400_s30, 64, %s402_s10, [#allocation13]  }
  0xff   :  { %613 = dma.done.wait [#allocation4], 128  }
 0x100   :  { %614 = vsyncadd [#allocation4], 4294967168 }
 0x101   :  { %615 = dma.done.wait [#allocation13], 64  }
 0x102   :  { %616 = vsyncadd [#allocation13], 4294967232 }
 0x103   :  { %413 = vsyncpa [#allocation3], 1 }
 0x104   :  { %414 = vsyncpa [#allocation6], 1 }
 0x105   :  { %415 = vsyncpa [#allocation9], 1 }
 0x106   :  { %416 = vsyncpa [#allocation4], 1 }
 0x107   :  { %417 = vsyncpa [#allocation13], 1 }

</bundles_post_ra>
